<compile_context>
chip_gen: v6e
topology: v6e:2x2x1
jax: 0.10.0
libtpu: 0.0.40
codegen_flags: <defaults>
</compile_context>

<pallas_src>
import functools

import jax
import jax.numpy as jnp
from jax.experimental import pallas as pl
from jax.experimental.pallas import tpu as pltpu

LANE = 128
# Widest lane-dense last-dims tried first (all multiples of 128).
_WIDTH_CANDIDATES = (2048, 1024, 512, 256, 128)
# Per-block upper bound (bytes of the *input* tile). 8 MiB f32 blocks ~= 2M
# elements; double-buffered in + out is 32 MiB, well inside the explicit
# vmem_limit_bytes below on v5e/v6e, and automatically shrunk on v7x.
_MAX_BLOCK_BYTES = 8 << 20


def _sublane_multiple(dtype) -> int:
    # f32 -> 8, bf16 -> 16, int8/fp8 -> 32 (sub-32-bit dtypes pack sublanes).
    return max(8, 32 // jnp.dtype(dtype).itemsize)


@functools.lru_cache(maxsize=None)
def _vmem_budget_bytes() -> int:
    """Generation-aware scoped-VMEM limit (explicit, not the default)."""
    try:
        cap = int(pltpu.get_tpu_info().vmem_capacity_bytes)
    except Exception:
        cap = 64 << 20  # conservative: v7x per-TensorCore VMEM
    # Leave ~25% headroom for Mosaic internal scratch and elementwise temps;
    # never ask for more than 96 MiB even on 128 MiB parts.
    return min((cap * 3) // 4, 96 << 20)


def _choose_tile_rows(rows, width, sub, itemsize, block_elems):
    """Pick the row-tile: big, sublane-aligned, exact divisor when possible,
    and >= 2 (prefer even) grid steps for medium/large tensors."""
    max_rows = max(sub, (block_elems // width) // sub * sub)
    total_bytes = rows * width * itemsize
    if total_bytes >= (1 << 20) and rows >= 4 * sub:
        min_steps = 4          # full pipeline overlap + v7x two-core balance
    elif total_bytes >= (256 << 10) and rows >= 2 * sub:
        min_steps = 2          # at least let both v7x cores participate
    else:
        min_steps = 1          # tiny tensor: per-step overhead dominates
    cap = max_rows
    if min_steps > 1:
        cap = min(cap, max(sub, (rows // min_steps) // sub * sub))
    if rows <= cap:
        return rows
    cap = max(sub, cap - cap % sub)
    best_any = None
    best_even = None
    for t in range(cap, sub - 1, -sub):
        if rows % t == 0:
            if best_any is None:
                best_any = t
            if (rows // t) % 2 == 0:
                best_even = t
                break
    if best_even is not None and (best_any is None or 2 * best_even >= best_any):
        return best_even       # exact split, even step count
    if best_any is not None:
        return best_any        # exact split
    return cap                 # partial last block (Pallas masks OOB writes)


def _residual_kernel(fn, x_ref, o_ref):
    x = x_ref[...]
    o_ref[...] = (fn(x) + x).astype(o_ref.dtype)


def residual_fused(fn, x, *, donate_input=False):
    """out = fn(x) + x, with fn traced into the Pallas kernel body (fused)."""
    orig_shape = x.shape
    dtype = x.dtype
    itemsize = jnp.dtype(dtype).itemsize
    n = x.size
    sub = _sublane_multiple(dtype)

    # ---- choose a wide, lane-dense 2-D view; avoid any padding pass.
    width = None
    for w in _WIDTH_CANDIDATES:
        if n % w == 0:
            width = w
            break
    if width is None:
        # Ragged total size: run the kernel on the 128-aligned prefix and
        # handle the (<128 element) tail with plain jnp.  This avoids the
        # full extra HBM read+write passes a pad + trailing-slice scheme adds.
        x_flat = x.reshape(-1)
        n_main = (n // LANE) * LANE
        tail = x_flat[n_main:]
        tail_out = (fn(tail) + tail).astype(dtype)
        if n_main == 0:
            return tail_out.reshape(orig_shape)
        main_out = residual_fused(fn, x_flat[:n_main], donate_input=donate_input)
        return jnp.concatenate([main_out, tail_out]).reshape(orig_shape)

    rows = n // width
    x2d = x.reshape(rows, width)

    # ---- block (tile) shape.
    block_elems = max(sub * width, _MAX_BLOCK_BYTES // itemsize)
    block_elems = min(block_elems, max(sub * width,
                                       (_vmem_budget_bytes() // 8) // itemsize))
    tile_rows = _choose_tile_rows(rows, width, sub, itemsize, block_elems)
    grid = (pl.cdiv(rows, tile_rows),)

    # ---- scheduling hint derived from the actual fused fn (not hard-coded).
    try:
        est = pl.estimate_cost(lambda a: fn(a) + a,
                               jax.ShapeDtypeStruct((rows, width), dtype))
        cost = pl.CostEstimate(flops=est.flops,
                               transcendentals=est.transcendentals,
                               bytes_accessed=2 * n * itemsize)
    except Exception:
        cost = pl.CostEstimate(flops=2 * n, transcendentals=0,
                               bytes_accessed=2 * n * itemsize)

    kernel = functools.partial(_residual_kernel, fn)
    out2d = pl.pallas_call(
        kernel,
        out_shape=jax.ShapeDtypeStruct((rows, width), dtype),
        grid_spec=pltpu.PrefetchScalarGridSpec(
            num_scalar_prefetch=0,
            grid=grid,
            in_specs=[pl.BlockSpec((tile_rows, width), lambda i: (i, 0))],
            out_specs=pl.BlockSpec((tile_rows, width), lambda i: (i, 0)),
        ),
        compiler_params=pltpu.CompilerParams(
            dimension_semantics=("parallel",),
            vmem_limit_bytes=_vmem_budget_bytes(),
        ),
        cost_estimate=cost,
        # Optionally reuse x's HBM buffer for the output (halves peak HBM
        # footprint; XLA inserts a copy if x is still live elsewhere).
        input_output_aliases={0: 0} if donate_input else {},
    )(x2d)

    return out2d.reshape(orig_shape)


class Residual:
    """JAX/Pallas analogue of the PyTorch Residual wrapper (no parameters)."""

    def __init__(self, fn, donate_input=False):
        self.fn = fn
        self.donate_input = donate_input

    def __call__(self, x, *args, **kwargs):
        # Extra args/kwargs are closed over; fn(x) must stay elementwise /
        # block-local over x for correct in-kernel fusion.
        # TODO(synk): for a non-elementwise fn (e.g. a conv block), compute fn
        # outside in plain JAX and fuse only the residual add in the kernel.
        return residual_fused(lambda xb: self.fn(xb, *args, **kwargs), x,
                              donate_input=self.donate_input)


if __name__ == "__main__":
    key = jax.random.PRNGKey(0)
    fn = jax.nn.silu
    res = Residual(fn)

    # 1) Small NCHW feature map consistent with a diffusion U-Net block
    #    (single-block path).
    x = jax.random.normal(key, (2, 4, 16, 16), dtype=jnp.float32)
    ref = fn(x) + x
    out = jax.block_until_ready(res(x))
    assert out.shape == x.shape and out.dtype == x.dtype
    assert jnp.allclose(out, ref, atol=1e-5, rtol=1e-5), "f32 small mismatch"

    # 2) Medium feature map (multi-step grid: exact split, even step count).
    xm = jax.random.normal(jax.random.PRNGKey(3), (2, 32, 32, 32),
                           dtype=jnp.float32)
    refm = fn(xm) + xm
    outm = jax.block_until_ready(res(xm))
    assert outm.shape == xm.shape
    assert jnp.allclose(outm, refm, atol=1e-5, rtol=1e-5), "f32 medium mismatch"

    # 3) Ragged size (kernel on 128-aligned prefix + plain-jnp tail).
    x2 = jax.random.normal(jax.random.PRNGKey(1), (3, 5, 7, 9),
                           dtype=jnp.float32)
    ref2 = fn(x2) + x2
    out2 = jax.block_until_ready(res(x2))
    assert out2.shape == x2.shape
    assert jnp.allclose(out2, ref2, atol=1e-5, rtol=1e-5), "ragged mismatch"

    # 4) bf16 input (native-dtype compute inside the kernel).
    x3 = jax.random.normal(jax.random.PRNGKey(2), (2, 8, 16, 16),
                           dtype=jnp.bfloat16)
    ref3 = fn(x3) + x3
    out3 = jax.block_until_ready(res(x3))
    assert out3.dtype == jnp.bfloat16 and out3.shape == x3.shape
    assert jnp.allclose(out3.astype(jnp.float32), ref3.astype(jnp.float32),
                        atol=2e-2, rtol=2e-2), "bf16 mismatch"

    print("KERNEL_OK")
</pallas_src>

<mosaic_0001>
module attributes {stable_mosaic.version = 11 : i64} {
  func.func @_residual_kernel(%arg0: i32, %arg1: memref<1x2048xf32, #tpu.memory_space<vmem>>, %arg2: memref<1x2048xf32, #tpu.memory_space<vmem>>) attributes {dimension_semantics = [#tpu.dimension_semantics<parallel>], iteration_bounds = array<i64: 1>, scalar_prefetch = 0 : i64, scratch_operands = 0 : i64, tpu.core_type = #tpu.core_type<tc>, window_params = [{transform_indices = @transform_0, window_bounds = array<i64: 1, 2048>}, {transform_indices = @transform_1, window_bounds = array<i64: 1, 2048>}]} {
    %c0 = arith.constant 0 : index
    %c0_0 = arith.constant 0 : index
    %0 = vector.load %arg1[%c0, %c0_0] : memref<1x2048xf32, #tpu.memory_space<vmem>>, vector<1x2048xf32>
    %1 = arith.negf %0 : vector<1x2048xf32>
    %2 = math.exp %1 : vector<1x2048xf32>
    %cst = arith.constant 1.000000e+00 : f32
    %3 = vector.broadcast %cst : f32 to vector<1x2048xf32>
    %4 = arith.addf %3, %2 : vector<1x2048xf32>
    %5 = arith.divf %3, %4 : vector<1x2048xf32>
    %6 = arith.mulf %0, %5 : vector<1x2048xf32>
    %7 = arith.addf %6, %0 : vector<1x2048xf32>
    %c0_1 = arith.constant 0 : index
    %c0_2 = arith.constant 0 : index
    %8 = vector.load %arg2[%c0_1, %c0_2] : memref<1x2048xf32, #tpu.memory_space<vmem>>, vector<1x2048xf32>
    tpu.vector_store %arg2[%c0_1, %c0_2], %7 {strides = array<i32>} : memref<1x2048xf32, #tpu.memory_space<vmem>>, vector<1x2048xf32>,
    return
  }
  func.func @transform_0(%arg0: i32) -> (i32, i32) {
    %c0_i32 = arith.constant 0 : i32
    %c0_i32_0 = arith.constant 0 : i32
    return %arg0, %c0_i32 : i32, i32
  }
  func.func @transform_1(%arg0: i32) -> (i32, i32) {
    %c0_i32 = arith.constant 0 : i32
    %c0_i32_0 = arith.constant 0 : i32
    return %arg0, %c0_i32 : i32, i32
  }
}

</mosaic_0001>

<bundles_post_ra>
// kernel: tpu_custom_call.1
= control target key start
LH: loop header
LB: loop body
LE: loop exit
PB: predicated region body
PF: predicated region fallthrough
CT: control target
= control target key end

     0   :  { %6 = vsyncpa [#allocation3], 0  ;;  %s130_s0 = inlined_call_operand.hbm [shape: f32[1,2048], index: 0, kind: input, shape index: {}]   ;;  %s131_s1 = inlined_call_operand.hbm [shape: f32[1,2048], index: 1, kind: output, shape index: {}]  }
   0x1   :  { %7 = vsyncpa [#allocation4], 0  ;;  %s112_s6 = smov [#allocation2]  }
   0x2   :  { %s14_s7 = sshll.u32 %s112_s6, 4  ;;  %s15_s7 = int_to_ptr.vmem [resolvable:$true] %s14_s7 }
   0x3   :  { %s76_s8 = scalar_lea.vmem %s15_s7, 256  ;;  %p81_p1 = scmp.lt.s32.totalorder %s15_s7, %s15_s7 }
   0x4   :  { %p77_p0 = scmp.ne.s32.totalorder %s15_s7, %s76_s8  ;;  %p82_p2 = scmp.lt.s32.totalorder %s76_s8, %s76_s8 }
   0x6   :  { %p83_p3 = por %p82_p2, %p81_p1 }
   0x8   :  { %p84_p4 = pnand %p83_p3, %p77_p0 }
   0xa   :  { %87 = shalt.err (!%p84_p4)
}
   0xb   :  { %17 = dma.hbm_to_vmem [thread:$0]  %s130_s0, 256, %s15_s7, [#allocation3]  }
   0xc   :  { %108 = dma.done.wait [#allocation3], 256  }
   0xd   :  { %109 = vsyncadd [#allocation3], 4294967040  ;;  %v21_v0 = vld [vmem:[#allocation2] sm:$0xff]  ;;  %v22_v1 = vld [vmem:[#allocation2 + $0x8] sm:$0xff]  ;;  %s113_s11 = smov [#allocation5]  }
   0xe   :  { %v56_v2 = vmul.f32 -1.442695, %v21_v0  ;;  %v57_v3 = vmul.f32 -1.442695, %v22_v1  ;;  %s47_s12 = sshll.u32 %s113_s11, 4  ;;  %s48_s12 = int_to_ptr.vmem [resolvable:$true] %s47_s12 }
   0xf   :  { %s88_s0 = scalar_lea.vmem %s48_s12, 256  ;;  %p93_p6 = scmp.lt.s32.totalorder %s48_s12, %s48_s12 }
  0x10   :  { %60 = vpow2.f32 %v56_v2  ;;  %p89_p5 = scmp.ne.s32.totalorder %s48_s12, %s88_s0  ;;  %p94_p7 = scmp.lt.s32.totalorder %s88_s0, %s88_s0 }
  0x11   :  { %62 = vpow2.f32 %v57_v3 }
  0x12   :  { %p95_p8 = por %p94_p7, %p93_p6 }
  0x14   :  { %p96_p9 = pnand %p95_p8, %p89_p5 }
  0x1d   :  { %v61_v4 = vpop.eup %60 }
  0x1e   :  { %v63_v5 = vpop.eup %62  ;;  %v29_v6 = vadd.f32 1.0, %v61_v4 }
  0x1f   :  { %v30_v7 = vadd.f32 1.0, %v63_v5 }
  0x20   :  { %64 = vrcp.f32 %v29_v6 }
  0x21   :  { %66 = vrcp.f32 %v30_v7 }
  0x2d   :  { %v65_v8 = vpop.eup %64 }
  0x2e   :  { %v67_v9 = vpop.eup %66  ;;  %v35_v10 = vmul.f32 %v65_v8, %v21_v0 }
  0x2f   :  { %v36_v11 = vmul.f32 %v67_v9, %v22_v1 }
  0x30   :  { %v37_v12 = vadd.f32 %v35_v10, %v21_v0 }
  0x31   :  { %v38_v13 = vadd.f32 %v36_v11, %v22_v1 }
  0x32   :  { %39 = vst [vmem:[#allocation5] sm:$0xff] %v37_v12 }
  0x33   :  { %40 = vst [vmem:[#allocation5 + $0x8] sm:$0xff] %v38_v13 }
  0x34   :  { %99 = shalt.err (!%p96_p9)
}
  0x35   :  { %50 = dma.vmem_to_hbm [thread:$0]  %s48_s12, 256, %s131_s1, [#allocation4]  }
  0x36   :  { %110 = dma.done.wait [#allocation4], 256  }
  0x37   :  { %111 = vsyncadd [#allocation4], 4294967040 }
  0x38   :  { %54 = vsyncpa [#allocation3], 1 }
  0x39   :  { %55 = vsyncpa [#allocation4], 1 }

</bundles_post_ra>
